<compile_context>
chip_gen: v5e
topology: v5e:2x2
jax: 0.10.0
libtpu: 0.0.40
codegen_flags: <defaults>
</compile_context>

<pallas_src>
import math

import jax
import jax.numpy as jnp
from jax.experimental import pallas as pl
from jax.experimental.pallas import tpu as pltpu

DELTA_T = 1.0          # module's self.delta_t
_MAX_BLOCK_ROWS = 512  # 512 x 128 x 4B = 256 KiB per block (x, dx, out)
_MAX_LANES = 1024      # cap on the flattened lane width F


def _state_dynamics_kernel(x_ref, dx_ref, coef_ref, sel_ref, out_ref):
    """Fused 2nd-order Euler step on a lane-dense (rows, F) view of the state."""
    x = x_ref[...].astype(jnp.float32)     # (TR, F) current state (flattened)
    dx = dx_ref[...].astype(jnp.float32)   # (TR, F) normalized state delta
    c = coef_ref[...]                      # (6, F)  per-lane affine coefficients
    a_v, a_a, c0 = c[0:1, :], c[1:2, :], c[2:3, :]
    a_n, b_n, m_pos = c[3:4, :], c[4:5, :], c[5:6, :]

    vel_c = jnp.clip(x, -1.0, 1.0)         # clamp; only vel lanes are consumed
    acc_c = jnp.clip(dx, -1.0, 1.0)

    # Denormalized vel_{t+1} on the vel lanes; exactly 0 on the pos lanes
    # (coefficients are zeroed there), so it cannot pollute the selector matmul.
    vel_tp1 = a_v * vel_c + a_a * acc_c + c0

    # Move delta_t * vel_{t+1} from each vel lane onto its sample's pos lane
    # with a constant block-diagonal selector on the (otherwise idle) MXU.
    shifted = jnp.dot(vel_tp1, sel_ref[...],
                      precision=jax.lax.Precision.HIGHEST,
                      preferred_element_type=jnp.float32)

    # pos lanes: pos_t + delta_t * vel_{t+1};  vel lanes: renormalized vel_{t+1}
    out = m_pos * x + shifted + a_n * vel_tp1 + b_n
    out_ref[...] = out.astype(out_ref.dtype)


def _build_tables(workspace_dim, lanes, vel_min, vel_max, acc_min, acc_max,
                  delta_t, dtype=jnp.float32):
    """Precompute the (6, F) per-lane affine table and the (F, F) selector."""
    W = workspace_dim
    group = 2 * W
    reps = lanes // group

    vel_min = jnp.asarray(vel_min, dtype).reshape(1, W)
    vel_max = jnp.asarray(vel_max, dtype).reshape(1, W)
    acc_min = jnp.asarray(acc_min, dtype).reshape(1, W)
    acc_max = jnp.asarray(acc_max, dtype).reshape(1, W)

    a_v = 0.5 * (vel_max - vel_min)                    # denorm velocity: a_v*v + b_v
    b_v = 0.5 * (vel_max + vel_min)
    a_a = 0.5 * (acc_max - acc_min)                    # denorm acceleration
    b_a = 0.5 * (acc_max + acc_min)
    inv_vr = 1.0 / (vel_max - vel_min)                 # exact reciprocal, computed once
    a_n = 2.0 * inv_vr                                 # renorm velocity: a_n*v + b_n
    b_n = -2.0 * vel_min * inv_vr - 1.0

    zeros_w = jnp.zeros((1, W), dtype)
    ones_w = jnp.ones((1, W), dtype)

    def lane_tile(pos_part, vel_part):
        return jnp.tile(jnp.concatenate([pos_part, vel_part], axis=1), (1, reps))

    coef = jnp.concatenate([
        lane_tile(zeros_w, a_v),                       # row 0: Av
        lane_tile(zeros_w, delta_t * a_a),             # row 1: Aa (dt folded in)
        lane_tile(zeros_w, b_v + delta_t * b_a),       # row 2: C0
        lane_tile(zeros_w, a_n),                       # row 3: An
        lane_tile(zeros_w, b_n),                       # row 4: Bn
        lane_tile(ones_w, zeros_w),                    # row 5: pos-lane mask
    ], axis=0)                                         # (6, F)

    # Selector: column j (a pos lane, j % 2W < W) picks source row k = j + W
    # (that sample's vel lane), scaled by delta_t. Vel-lane columns are zero.
    cols = jnp.arange(lanes, dtype=jnp.int32)
    is_pos_col = (cols % group) < W
    src_row = cols + W
    rows = jnp.arange(lanes, dtype=jnp.int32)[:, None]
    sel = ((rows == src_row[None, :]) & is_pos_col[None, :]).astype(dtype) * delta_t
    return coef, sel


def state_dynamics_forward(x, dx, primitive_type=None, *, workspace_dim,
                           vel_min, vel_max, acc_min, acc_max, delta_t=DELTA_T):
    """JAX wrapper reproducing StateDynamics.forward (order == 2).

    x, dx:            (B, dim_state) with dim_state = 2 * workspace_dim
    primitive_type:   (B,) — unused by forward() for order-2 systems
    vel_min/.../acc_max: (1, workspace_dim) normalization buffers
    returns:          (B, dim_state) next state
    """
    del primitive_type  # not used by forward() for 2nd-order systems
    B, dim_state = x.shape
    W = workspace_dim
    assert dim_state == 2 * W
    group = 2 * W

    # Lane width: smallest multiple of 128 that is also a multiple of the
    # per-sample group 2W (so groups never straddle rows). Falls back to the
    # (masked-store) 2W-wide layout only for pathological workspace_dims.
    lanes = (128 * group) // math.gcd(128, group)
    if lanes > _MAX_LANES:
        lanes = group

    # Pad batch so the flattened view has a whole number of 8-row slabs
    # (keeps the sublane block dim a multiple of 8; the reshape itself is free).
    unit = (8 * lanes) // group
    b_pad = pl.cdiv(B, unit) * unit
    if b_pad != B:
        x = jnp.pad(x, ((0, b_pad - B), (0, 0)))
        dx = jnp.pad(dx, ((0, b_pad - B), (0, 0)))
    rows = (b_pad * group) // lanes

    xf = x.reshape(rows, lanes)     # contiguous row-major reshape: no copy
    dxf = dx.reshape(rows, lanes)

    coef, sel = _build_tables(W, lanes, vel_min, vel_max, acc_min, acc_max,
                              delta_t, dtype=jnp.float32)

    if rows <= _MAX_BLOCK_ROWS:
        block_rows, grid = rows, (1,)
    else:
        block_rows, grid = _MAX_BLOCK_ROWS, (pl.cdiv(rows, _MAX_BLOCK_ROWS),)

    row_spec = pl.BlockSpec((block_rows, lanes), lambda i: (i, 0))
    coef_spec = pl.BlockSpec((6, lanes), lambda i: (0, 0))
    sel_spec = pl.BlockSpec((lanes, lanes), lambda i: (0, 0))

    outf = pl.pallas_call(
        _state_dynamics_kernel,
        grid=grid,
        in_specs=[row_spec, row_spec, coef_spec, sel_spec],
        out_specs=row_spec,
        out_shape=jax.ShapeDtypeStruct((rows, lanes), x.dtype),
        compiler_params=pltpu.CompilerParams(
            dimension_semantics=("parallel",)),  # v7x: shard rows across 2 TCs
    )(xf, dxf, coef, sel)

    # Free reshape back; drop batch padding (no-op when b_pad == B).
    return outf.reshape(b_pad, dim_state)[:B]


def _reference_forward(x, dx, *, workspace_dim, vel_min, vel_max,
                       acc_min, acc_max, delta_t=DELTA_T):
    """Pure-jnp reference mirroring the PyTorch forward (order 2)."""
    W = workspace_dim
    pos_t = x[:, :W]
    vel_t = jnp.clip(x[:, W:], -1.0, 1.0)
    acc_t = jnp.clip(dx[:, W:], -1.0, 1.0)
    vel_d = 0.5 * (vel_t + 1.0) * (vel_max - vel_min) + vel_min
    acc_d = 0.5 * (acc_t + 1.0) * (acc_max - acc_min) + acc_min
    vel_tp1_d = vel_d + acc_d * delta_t
    pos_tp1 = pos_t + vel_tp1_d * delta_t
    vel_tp1_n = 2.0 * (vel_tp1_d - vel_min) / (vel_max - vel_min) - 1.0
    return jnp.concatenate([pos_tp1, vel_tp1_n], axis=1)


if __name__ == "__main__":
    key = jax.random.PRNGKey(0)
    configs = [
        dict(B=256, W=2),   # lane-dense, no padding: 256*4 elems -> (8, 128)
        dict(B=8,   W=2),   # tiny batch (module-scale): padded to one (8, 128) slab
        dict(B=40,  W=3),   # non power-of-2 workspace dim: F = lcm(6, 128) = 384
    ]
    for cfg in configs:
        B, W = cfg["B"], cfg["W"]
        dim_state = 2 * W
        key, kx, kdx, kp = jax.random.split(key, 4)
        x = jax.random.normal(kx, (B, dim_state), dtype=jnp.float32)
        dx = jax.random.normal(kdx, (B, dim_state), dtype=jnp.float32)
        primitive_type = jax.random.randint(kp, (B,), 0, 1)

        # Per-dim normalization buffers (set_normalization_params would fill
        # these; the module's default zeros would divide by zero).
        idx = jnp.arange(W, dtype=jnp.float32).reshape(1, W)
        vel_min = -1.5 - 0.10 * idx
        vel_max = 2.0 + 0.20 * idx
        acc_min = -0.8 - 0.05 * idx
        acc_max = 1.2 + 0.10 * idx

        out = state_dynamics_forward(
            x, dx, primitive_type, workspace_dim=W,
            vel_min=vel_min, vel_max=vel_max, acc_min=acc_min, acc_max=acc_max)
        out = jax.block_until_ready(out)

        ref = _reference_forward(
            x, dx, workspace_dim=W,
            vel_min=vel_min, vel_max=vel_max, acc_min=acc_min, acc_max=acc_max)

        assert out.shape == (B, dim_state)
        assert jnp.allclose(out, ref, atol=1e-5, rtol=1e-5), f"mismatch for {cfg}"

    print("KERNEL_OK")
</pallas_src>

<mosaic_0001>
module attributes {stable_mosaic.version = 11 : i64} {
  func.func @_state_dynamics_kernel(%arg0: i32, %arg1: memref<8x128xf32, #tpu.memory_space<vmem>>, %arg2: memref<8x128xf32, #tpu.memory_space<vmem>>, %arg3: memref<6x128xf32, #tpu.memory_space<vmem>>, %arg4: memref<128x128xf32, #tpu.memory_space<vmem>>, %arg5: memref<8x128xf32, #tpu.memory_space<vmem>>) attributes {dimension_semantics = [#tpu.dimension_semantics<parallel>], iteration_bounds = array<i64: 1>, scalar_prefetch = 0 : i64, scratch_operands = 0 : i64, tpu.core_type = #tpu.core_type<tc>, window_params = [{transform_indices = @transform_0, window_bounds = array<i64: 8, 128>}, {transform_indices = @transform_1, window_bounds = array<i64: 8, 128>}, {pipeline_mode = #tpu.pipeline_mode<synchronous>, transform_indices = @transform_2, window_bounds = array<i64: 6, 128>}, {pipeline_mode = #tpu.pipeline_mode<synchronous>, transform_indices = @transform_3, window_bounds = array<i64: 128, 128>}, {transform_indices = @transform_4, window_bounds = array<i64: 8, 128>}]} {
    %c0 = arith.constant 0 : index
    %c0_0 = arith.constant 0 : index
    %0 = vector.load %arg1[%c0, %c0_0] : memref<8x128xf32, #tpu.memory_space<vmem>>, vector<8x128xf32>
    %c0_1 = arith.constant 0 : index
    %c0_2 = arith.constant 0 : index
    %1 = vector.load %arg2[%c0_1, %c0_2] : memref<8x128xf32, #tpu.memory_space<vmem>>, vector<8x128xf32>
    %c0_3 = arith.constant 0 : index
    %c0_4 = arith.constant 0 : index
    %2 = vector.load %arg3[%c0_3, %c0_4] : memref<6x128xf32, #tpu.memory_space<vmem>>, vector<6x128xf32>
    %3 = vector.extract_strided_slice %2 {offsets = [0, 0], sizes = [1, 128], strides = [1, 1]} : vector<6x128xf32> to vector<1x128xf32>
    %4 = vector.extract_strided_slice %2 {offsets = [1, 0], sizes = [1, 128], strides = [1, 1]} : vector<6x128xf32> to vector<1x128xf32>
    %5 = vector.extract_strided_slice %2 {offsets = [2, 0], sizes = [1, 128], strides = [1, 1]} : vector<6x128xf32> to vector<1x128xf32>
    %6 = vector.extract_strided_slice %2 {offsets = [3, 0], sizes = [1, 128], strides = [1, 1]} : vector<6x128xf32> to vector<1x128xf32>
    %7 = vector.extract_strided_slice %2 {offsets = [4, 0], sizes = [1, 128], strides = [1, 1]} : vector<6x128xf32> to vector<1x128xf32>
    %8 = vector.extract_strided_slice %2 {offsets = [5, 0], sizes = [1, 128], strides = [1, 1]} : vector<6x128xf32> to vector<1x128xf32>
    %cst = arith.constant -1.000000e+00 : f32
    %cst_5 = arith.constant 1.000000e+00 : f32
    %9 = vector.broadcast %cst : f32 to vector<8x128xf32>
    %10 = arith.maximumf %9, %0 : vector<8x128xf32>
    %11 = vector.broadcast %cst_5 : f32 to vector<8x128xf32>
    %12 = arith.minimumf %11, %10 : vector<8x128xf32>
    %cst_6 = arith.constant -1.000000e+00 : f32
    %cst_7 = arith.constant 1.000000e+00 : f32
    %13 = vector.broadcast %cst_6 : f32 to vector<8x128xf32>
    %14 = arith.maximumf %13, %1 : vector<8x128xf32>
    %15 = vector.broadcast %cst_7 : f32 to vector<8x128xf32>
    %16 = arith.minimumf %15, %14 : vector<8x128xf32>
    %17 = vector.broadcast %3 : vector<1x128xf32> to vector<8x128xf32>
    %18 = arith.mulf %17, %12 : vector<8x128xf32>
    %19 = vector.broadcast %4 : vector<1x128xf32> to vector<8x128xf32>
    %20 = arith.mulf %19, %16 : vector<8x128xf32>
    %21 = arith.addf %18, %20 : vector<8x128xf32>
    %22 = vector.broadcast %5 : vector<1x128xf32> to vector<8x128xf32>
    %23 = arith.addf %21, %22 : vector<8x128xf32>
    %c0_8 = arith.constant 0 : index
    %c0_9 = arith.constant 0 : index
    %24 = vector.load %arg4[%c0_8, %c0_9] : memref<128x128xf32, #tpu.memory_space<vmem>>, vector<128x128xf32>
    %cst_10 = arith.constant dense<0.000000e+00> : vector<8x128xf32>
    %25 = tpu.matmul %23, %24, %cst_10 {dimension_numbers = #tpu.dot_dimension_numbers<[1], [0], [0], [1], [0, 0, 1, 1], [], []>, precision = #tpu.contract_precision<fp32>} : vector<8x128xf32>, vector<128x128xf32>, vector<8x128xf32> -> vector<8x128xf32>
    %26 = vector.broadcast %8 : vector<1x128xf32> to vector<8x128xf32>
    %27 = arith.mulf %26, %0 : vector<8x128xf32>
    %28 = arith.addf %27, %25 : vector<8x128xf32>
    %29 = vector.broadcast %6 : vector<1x128xf32> to vector<8x128xf32>
    %30 = arith.mulf %29, %23 : vector<8x128xf32>
    %31 = arith.addf %28, %30 : vector<8x128xf32>
    %32 = vector.broadcast %7 : vector<1x128xf32> to vector<8x128xf32>
    %33 = arith.addf %31, %32 : vector<8x128xf32>
    %c0_11 = arith.constant 0 : index
    %c0_12 = arith.constant 0 : index
    %34 = vector.load %arg5[%c0_11, %c0_12] : memref<8x128xf32, #tpu.memory_space<vmem>>, vector<8x128xf32>
    tpu.vector_store %arg5[%c0_11, %c0_12], %33 {strides = array<i32>} : memref<8x128xf32, #tpu.memory_space<vmem>>, vector<8x128xf32>,
    return
  }
  func.func @transform_0(%arg0: i32) -> (i32, i32) {
    %c0_i32 = arith.constant 0 : i32
    %c0_i32_0 = arith.constant 0 : i32
    return %arg0, %c0_i32 : i32, i32
  }
  func.func @transform_1(%arg0: i32) -> (i32, i32) {
    %c0_i32 = arith.constant 0 : i32
    %c0_i32_0 = arith.constant 0 : i32
    return %arg0, %c0_i32 : i32, i32
  }
  func.func @transform_2(%arg0: i32) -> (i32, i32) {
    %c0_i32 = arith.constant 0 : i32
    %c0_i32_0 = arith.constant 0 : i32
    %c0_i32_1 = arith.constant 0 : i32
    return %c0_i32, %c0_i32_0 : i32, i32
  }
  func.func @transform_3(%arg0: i32) -> (i32, i32) {
    %c0_i32 = arith.constant 0 : i32
    %c0_i32_0 = arith.constant 0 : i32
    %c0_i32_1 = arith.constant 0 : i32
    return %c0_i32, %c0_i32_0 : i32, i32
  }
  func.func @transform_4(%arg0: i32) -> (i32, i32) {
    %c0_i32 = arith.constant 0 : i32
    %c0_i32_0 = arith.constant 0 : i32
    return %arg0, %c0_i32 : i32, i32
  }
}

</mosaic_0001>

<bundles_post_ra>
// kernel: tpu_custom_call.1
= control target key start
LH: loop header
LB: loop body
LE: loop exit
PB: predicated region body
PF: predicated region fallthrough
CT: control target
= control target key end

     0   :  { %9 = vsyncpa [#allocation3], 0  ;;  %s911_s0 = inlined_call_operand.hbm [shape: f32[8,128], index: 0, kind: input, shape index: {}]   ;;  %s912_s1 = inlined_call_operand.hbm [shape: f32[8,128], index: 1, kind: input, shape index: {}]   ;;  %s913_s2 = inlined_call_operand.hbm [shape: f32[6,128], index: 2, kind: input, shape index: {}]   ;;  %s914_s3 = inlined_call_operand.hbm [shape: f32[128,128], index: 3, kind: input, shape index: {}]   ;;  %s915_s4 = inlined_call_operand.hbm [shape: f32[8,128], index: 4, kind: output, shape index: {}]  }
   0x1   :  { %10 = vsyncpa [#allocation6], 0 }
   0x2   :  { %11 = vsyncpa [#allocation9], 0  ;;  %s29_s17 = sshll.u32 %s912_s1, 4  ;;  %s30_s17 = int_to_ptr.hbm [resolvable:$true] %s29_s17 }
   0x3   :  { %12 = vsyncpa [#allocation4], 0  ;;  %s611_s18 = smov [#allocation5]   ;;  %s18_s22 = sshll.u32 %s911_s0, 4  ;;  %s19_s22 = int_to_ptr.hbm [resolvable:$true] %s18_s22 }
   0x4   :  { %s31_s19 = sshll.u32 %s611_s18, 4  ;;  %s612_s23 = smov [#allocation2]   ;;  %s32_s19 = int_to_ptr.vmem [resolvable:$true] %s31_s19 }
   0x5   :  { %34 = dma.hbm_to_vmem [thread:$0]  %s30_s17, 128, %s32_s19, [#allocation6]  }
   0x6   :  { %s20_s24 = sshll.u32 %s612_s23, 4  ;;  %s40_s27 = sshll.u32 %s913_s2, 4  ;;  %s21_s24 = int_to_ptr.vmem [resolvable:$true] %s20_s24  ;;  %s41_s27 = int_to_ptr.hbm [resolvable:$true] %s40_s27 }
   0x7   :  { %23 = dma.hbm_to_vmem [thread:$0]  %s19_s22, 128, %s21_s24, [#allocation3]  }
   0x8   :  { %s50_s29 = sshll.u32 %s914_s3, 4  ;;  %s613_s30 = smov [#allocation7]   ;;  %s51_s29 = int_to_ptr.hbm [resolvable:$true] %s50_s29 }
   0x9   :  { %s42_s5 = sshll.u32 %s613_s30, 4  ;;  %s614_s0 = smov [#allocation8]   ;;  %s43_s5 = int_to_ptr.vmem [resolvable:$true] %s42_s5 }
   0xa   :  { %45 = dma.hbm_to_vmem [thread:$0]  %s41_s27, 128, %s43_s5, [#allocation6]  }
   0xb   :  { %s52_s6 = sshll.u32 %s614_s0, 4  ;;  %s615_s7 = smov 128   ;;  %s53_s6 = int_to_ptr.vmem [resolvable:$true] %s52_s6 }
   0xc   :  { %s616_s8 = smov 8  }
   0xd   :  { %58 = dma.hbm_to_vmem [thread:$0]  %s51_s29, 2048, %s53_s6, [#allocation9], %s615_s7, %s615_s7, %s616_s8  }
   0xe   :  { %603 = dma.done.wait [#allocation3], 128  }
   0xf   :  { %604 = vsyncadd [#allocation3], 4294967168 }
  0x10   :  { %605 = dma.done.wait [#allocation6], 256  }
  0x11   :  { %606 = vsyncadd [#allocation6], 4294967040 }
  0x12   :  { %607 = dma.done.wait [#allocation9], 2048  }
  0x13   :  { %608 = vsyncadd [#allocation9], 4294965248  ;;  %v104_v0 = vld [vmem:[#allocation8 + $0x78] sm:$0xff]  ;;  %v103_v1 = vld [vmem:[#allocation8 + $0x70] sm:$0xff]  ;;  %s617_s2 = smov [#allocation10]   ;;  %s462_s11 = sshll.u32 %s915_s4, 4  ;;  %s463_s11 = int_to_ptr.hbm [resolvable:$true] %s462_s11 }
  0x14   :  { %v102_v2 = vld [vmem:[#allocation8 + $0x68] sm:$0xff]  ;;  %v655_v3 = vand.u32 4294901760, %v104_v0  ;;  %v657_v4 = vand.u32 4294901760, %v103_v1  ;;  %v101_v6 = vld [vmem:[#allocation8 + $0x60] sm:$0xff]  ;;  %v100_v7 = vld [vmem:[#allocation8 + $0x58] sm:$0xff]  ;;  %s460_s3 = sshll.u32 %s617_s2, 4  ;;  %s461_s3 = int_to_ptr.vmem [resolvable:$true] %s460_s3 }
  0x15   :  { %v659_v5 = vand.u32 4294901760, %v102_v2  ;;  %v99_v8 = vld [vmem:[#allocation8 + $0x50] sm:$0xff]  ;;  %v661_v9 = vand.u32 4294901760, %v101_v6  ;;  %v663_v10 = vand.u32 4294901760, %v100_v7  ;;  %v98_v12 = vld [vmem:[#allocation8 + $0x48] sm:$0xff]  ;;  %v97_v13 = vld [vmem:[#allocation8 + $0x40] sm:$0xff] }
  0x16   :  { %v665_v11 = vand.u32 4294901760, %v99_v8  ;;  %106 = vmatpush.msra.mxu0 %v655_v3  ;;  %v669_v14 = vsub.f32 %v104_v0, %v655_v3  ;;  %v672_v15 = vsub.f32 %v103_v1, %v657_v4  ;;  %v677_v17 = vand.u32 4294901760, %v98_v12  ;;  %302 = vmatpush.msra.mxu3 %v655_v3  ;;  %v96_v21 = vld [vmem:[#allocation8 + $0x38] sm:$0xff]  ;;  %v95_v26 = vld [vmem:[#allocation8 + $0x30] sm:$0xff]  ;;  %v94_v36 = vld [vmem:[#allocation8 + $0x28] sm:$0xff] }
  0x17   :  { %v675_v16 = vsub.f32 %v102_v2, %v659_v5  ;;  %v681_v18 = vsub.f32 %v101_v6, %v661_v9  ;;  %v684_v19 = vsub.f32 %v100_v7, %v663_v10  ;;  %v693_v25 = vand.u32 4294901760, %v97_v13  ;;  %v93_v41 = vld [vmem:[#allocation8 + $0x20] sm:$0xff]  ;;  %v92_v47 = vld [vmem:[#allocation8 + $0x18] sm:$0xff]  ;;  %v91_v55 = vld [vmem:[#allocation8 + $0x10] sm:$0xff] }
  0x18   :  { %v687_v20 = vsub.f32 %v99_v8, %v665_v11  ;;  %108 = vmatpush.msra.mxu0 %v657_v4  ;;  %v148_v22 = vand.u32 4294901760, %v669_v14  ;;  %v154_v23 = vand.u32 4294901760, %v672_v15  ;;  %249 = vmatpush.msra.mxu2 %v669_v14  ;;  %v699_v29 = vsub.f32 %v98_v12, %v677_v17  ;;  %v90_v59 = vld [vmem:[#allocation8 + $0x8] sm:$0xff]  ;;  %v89_v2 = vld [vmem:[#allocation8] sm:$0xff]  ;;  %v76_v6 = vld [vmem:[#allocation5] sm:$0xff] }
  0x19   :  { %v160_v24 = vand.u32 4294901760, %v675_v16  ;;  %v166_v27 = vand.u32 4294901760, %v681_v18  ;;  %v172_v28 = vand.u32 4294901760, %v684_v19  ;;  %304 = vmatpush.msra.mxu3 %v657_v4  ;;  %v712_v33 = vand.u32 4294901760, %v96_v21  ;;  %v770_v62 = vld [vmem:[#allocation2] sm:$0xff] }
  0x1a   :  { %110 = vmatpush.msra.mxu0 %v659_v5  ;;  %v149_v30 = vsub.f32 %v669_v14, %v148_v22  ;;  %v155_v31 = vsub.f32 %v672_v15, %v154_v23  ;;  %252 = vmatpush.msra.mxu2 %v672_v15  ;;  %v178_v34 = vand.u32 4294901760, %v687_v20  ;;  %v716_v35 = vand.u32 4294901760, %v95_v26 }
  0x1b   :  { %v161_v32 = vsub.f32 %v675_v16, %v160_v24  ;;  %306 = vmatpush.msra.mxu3 %v659_v5  ;;  %v167_v39 = vsub.f32 %v681_v18, %v166_v27  ;;  %v724_v40 = vsub.f32 %v97_v13, %v693_v25  ;;  %v173_v42 = vsub.f32 %v684_v19, %v172_v28  ;;  %v786_v13 = vld [vmem:[#allocation7] sm:$0x3f] }
  0x1c   :  { %v150_v37 = vand.u32 4294901760, %v149_v30  ;;  %112 = vmatpush.msra.mxu0 %v661_v9  ;;  %v156_v38 = vand.u32 4294901760, %v155_v31  ;;  %255 = vmatpush.msra.mxu2 %v675_v16  ;;  %v184_v44 = vand.u32 4294901760, %v699_v29  ;;  %v733_v45 = vand.u32 4294901760, %v94_v36 }
  0x1d   :  { %308 = vmatpush.msra.mxu3 %v661_v9  ;;  %v162_v43 = vand.u32 4294901760, %v161_v32  ;;  %v736_v46 = vsub.f32 %v96_v21, %v712_v33  ;;  %v190_v48 = vand.u32 4294901760, %v724_v40  ;;  %v739_v49 = vand.u32 4294901760, %v93_v41 }
  0x1e   :  { %151 = vmatpush.msra.mxu1 %v150_v37  ;;  %114 = vmatpush.msra.mxu0 %v663_v10  ;;  %v168_v50 = vand.u32 4294901760, %v167_v39  ;;  %v179_v51 = vsub.f32 %v687_v20, %v178_v34  ;;  %v748_v52 = vsub.f32 %v95_v26, %v716_v35  ;;  %v751_v54 = vand.u32 4294901760, %v92_v47 }
  0x1f   :  { %258 = vmatpush.msra.mxu2 %v681_v18  ;;  %310 = vmatpush.msra.mxu3 %v663_v10  ;;  %v196_v53 = vand.u32 4294901760, %v736_v46  ;;  %v174_v56 = vand.u32 4294901760, %v173_v42  ;;  %v185_v57 = vsub.f32 %v699_v29, %v184_v44  ;;  %v760_v58 = vsub.f32 %v94_v36, %v733_v45 }
  0x20   :  { %157 = vmatpush.msra.mxu1 %v156_v38  ;;  %116 = vmatpush.msra.mxu0 %v665_v11  ;;  %v191_v60 = vsub.f32 %v724_v40, %v190_v48  ;;  %v766_v61 = vsub.f32 %v93_v41, %v739_v49  ;;  %v180_v63 = vand.u32 4294901760, %v179_v51  ;;  %v202_v0 = vand.u32 4294901760, %v748_v52 }
  0x21   :  { %261 = vmatpush.msra.mxu2 %v684_v19  ;;  %312 = vmatpush.msra.mxu3 %v665_v11  ;;  %v774_v1 = vand.u32 4294901760, %v91_v55  ;;  %v197_v7 = vsub.f32 %v736_v46, %v196_v53  ;;  %v779_v8 = vand.u32 4294901760, %v90_v59  ;;  %v782_v12 = vsub.f32 %v92_v47, %v751_v54 }
  0x22   :  { %163 = vmatpush.msra.mxu1 %v162_v43  ;;  %118 = vmatpush.msra.mxu0 %v677_v17  ;;  %v186_v21 = vand.u32 4294901760, %v185_v57  ;;  %v208_v26 = vand.u32 4294901760, %v760_v58  ;;  %v474_v30 = vclamps-f32 %v770_v62, 1.0  ;;  %v192_v31 = vand.u32 4294901760, %v191_v60 }
  0x23   :  { %264 = vmatpush.msra.mxu2 %v687_v20  ;;  %314 = vmatpush.msra.mxu3 %v677_v17  ;;  %v214_v32 = vand.u32 4294901760, %v766_v61  ;;  %v792_v36 = vand.u32 4294901760, %v89_v2  ;;  %v475_v37 = vclamps-f32 %v76_v6, 1.0  ;;  %v203_v38 = vsub.f32 %v748_v52, %v202_v0 }
  0x24   :  { %169 = vmatpush.msra.mxu1 %v168_v50  ;;  %120 = vmatpush.msra.mxu0 %v693_v25  ;;  %v801_v39 = vsub.f32 %v91_v55, %v774_v1  ;;  %v82_v41 = vperm.slane %v786_v13, 0  ;;  %v84_v42 = vperm.slane %v786_v13, 1  ;;  %v198_v43 = vand.u32 4294901760, %v197_v7 }
  0x25   :  { %267 = vmatpush.msra.mxu2 %v699_v29  ;;  %316 = vmatpush.msra.mxu3 %v693_v25  ;;  %v220_v47 = vand.u32 4294901760, %v782_v12  ;;  %v807_v50 = vsub.f32 %v90_v59, %v779_v8  ;;  %v209_v51 = vsub.f32 %v760_v58, %v208_v26  ;;  %v87_v57 = vperm.slane %v786_v13, 2 }
  0x26   :  { %175 = vmatpush.msra.mxu1 %v174_v56  ;;  %122 = vmatpush.msra.mxu0 %v712_v33  ;;  %v83_v55 = vmul.f32 %v474_v30, %v82_v41  ;;  %v85_v56 = vmul.f32 %v475_v37, %v84_v42  ;;  %v215_v59 = vsub.f32 %v766_v61, %v214_v32  ;;  %v204_v60 = vand.u32 4294901760, %v203_v38 }
  0x27   :  { %270 = vmatpush.msra.mxu2 %v724_v40  ;;  %318 = vmatpush.msra.mxu3 %v712_v33  ;;  %v824_v6 = vsub.f32 %v89_v2, %v792_v36  ;;  %v221_v30 = vsub.f32 %v782_v12, %v220_v47  ;;  %v446_v15 = vperm.slane %v786_v13, 5 }
  0x28   :  { %181 = vmatpush.msra.mxu1 %v180_v63  ;;  %124 = vmatpush.msra.mxu0 %v716_v35  ;;  %v226_v63 = vand.u32 4294901760, %v801_v39  ;;  %v86_v7 = vadd.f32 %v85_v56, %v83_v55  ;;  %v216_v2 = vand.u32 4294901760, %v215_v59 }
  0x29   :  { %273 = vmatpush.msra.mxu2 %v736_v46  ;;  %320 = vmatpush.msra.mxu3 %v716_v35  ;;  %v238_v41 = vand.u32 4294901760, %v824_v6  ;;  %v447_v19 = vmul.f32 %v446_v15, %v770_v62 }
  0x2a   :  { %187 = vmatpush.msra.mxu1 %v186_v21  ;;  %126 = vmatpush.msra.mxu0 %v733_v45  ;;  %v210_v21 = vand.u32 4294901760, %v209_v51  ;;  %v833_v37 = vadd.f32 %v87_v57, %v86_v7  ;;  %v227_v38 = vsub.f32 %v801_v39, %v226_v63 }
  0x2b   :  { %276 = vmatpush.msra.mxu2 %v748_v52  ;;  %322 = vmatpush.msra.mxu3 %v733_v45  ;;  %v239_v57 = vsub.f32 %v824_v6, %v238_v41 }
  0x2c   :  { %193 = vmatpush.msra.mxu1 %v192_v31  ;;  %128 = vmatpush.msra.mxu0 %v739_v49  ;;  %v232_v31 = vand.u32 4294901760, %v807_v50  ;;  %v137_v42 = vand.u32 4294901760, %v833_v37  ;;  %v228_v56 = vand.u32 4294901760, %v227_v38 }
  0x2d   :  { %279 = vmatpush.msra.mxu2 %v760_v58  ;;  %324 = vmatpush.msra.mxu3 %v739_v49 }
  0x2e   :  { %199 = vmatpush.msra.mxu1 %v198_v43  ;;  %130 = vmatpush.msra.mxu0 %v751_v54  ;;  %v222_v43 = vand.u32 4294901760, %v221_v30  ;;  %v233_v51 = vsub.f32 %v807_v50, %v232_v31  ;;  %v138_v55 = vsub.f32 %v833_v37, %v137_v42 }
  0x2f   :  { %282 = vmatpush.msra.mxu2 %v766_v61  ;;  %326 = vmatpush.msra.mxu3 %v751_v54 }
  0x30   :  { %205 = vmatpush.msra.mxu1 %v204_v60  ;;  %132 = vmatpush.msra.mxu0 %v774_v1  ;;  %v139_v59 = vand.u32 4294901760, %v138_v55  ;;  %v234_v60 = vand.u32 4294901760, %v233_v51 }
  0x31   :  { %285 = vmatpush.msra.mxu2 %v782_v12  ;;  %328 = vmatpush.msra.mxu3 %v774_v1 }
  0x32   :  { %211 = vmatpush.msra.mxu1 %v210_v21  ;;  %134 = vmatpush.msra.mxu0 %v779_v8  ;;  %v140_v7 = vsub.f32 %v138_v55, %v139_v59  ;;  %v240_v21 = vand.u32 4294901760, %v239_v57 }
  0x33   :  { %288 = vmatpush.msra.mxu2 %v801_v39  ;;  %330 = vmatpush.msra.mxu3 %v779_v8 }
  0x34   :  { %217 = vmatpush.msra.mxu1 %v216_v2  ;;  %136 = vmatpush.msra.mxu0 %v792_v36  ;;  %v141_v30 = vand.u32 4294901760, %v140_v7 }
  0x35   :  { %291 = vmatpush.msra.mxu2 %v807_v50  ;;  %332 = vmatpush.msra.mxu3 %v792_v36 }
  0x36   :  { %343 = vmatpush.msrb.mxu0 %v148_v22  ;;  %223 = vmatpush.msra.mxu1 %v222_v43 }
  0x37   :  { %294 = vmatpush.msra.mxu2 %v824_v6  ;;  %336 = vmatmul.f32.vlgmr.msra.gmra.mxu3 %v139_v59 }
  0x38   :  { %347 = vmatpush.msrb.mxu0 %v154_v23  ;;  %229 = vmatpush.msra.mxu1 %v228_v56 }
  0x39   :  { %297 = vmatmul.f32.vlgmr.msra.gmra.mxu2 %v138_v55  ;;  %142 = vmatmul.f32.vlgmr.msra.gmra.mxu0 %v141_v30 }
  0x3a   :  { %351 = vmatpush.msrb.mxu0 %v160_v24  ;;  %235 = vmatpush.msra.mxu1 %v234_v60 }
  0x3c   :  { %355 = vmatpush.msrb.mxu0 %v166_v27  ;;  %241 = vmatpush.msra.mxu1 %v240_v21 }
  0x3d   :  { %243 = vmatmul.f32.vlgmr.msra.gmra.mxu1 %v137_v42 }
  0x3e   :  { %410 = vmatpush.msrb.mxu1 %v655_v3  ;;  %359 = vmatpush.msrb.mxu0 %v172_v28 }
  0x40   :  { %412 = vmatpush.msrb.mxu1 %v657_v4  ;;  %363 = vmatpush.msrb.mxu0 %v178_v34 }
  0x42   :  { %414 = vmatpush.msrb.mxu1 %v659_v5  ;;  %367 = vmatpush.msrb.mxu0 %v184_v44 }
  0x44   :  { %416 = vmatpush.msrb.mxu1 %v661_v9  ;;  %371 = vmatpush.msrb.mxu0 %v190_v48 }
  0x46   :  { %418 = vmatpush.msrb.mxu1 %v663_v10  ;;  %375 = vmatpush.msrb.mxu0 %v196_v53 }
  0x48   :  { %420 = vmatpush.msrb.mxu1 %v665_v11  ;;  %379 = vmatpush.msrb.mxu0 %v202_v0 }
  0x4a   :  { %422 = vmatpush.msrb.mxu1 %v677_v17  ;;  %383 = vmatpush.msrb.mxu0 %v208_v26  ;;  %v449_v17 = vperm.slane %v786_v13, 3 }
  0x4c   :  { %424 = vmatpush.msrb.mxu1 %v693_v25  ;;  %387 = vmatpush.msrb.mxu0 %v214_v32  ;;  %v450_v23 = vmul.f32 %v449_v17, %v833_v37  ;;  %v452_v25 = vperm.slane %v786_v13, 4 }
  0x4e   :  { %426 = vmatpush.msrb.mxu1 %v712_v33  ;;  %391 = vmatpush.msrb.mxu0 %v220_v47 }
  0x50   :  { %428 = vmatpush.msrb.mxu1 %v716_v35  ;;  %395 = vmatpush.msrb.mxu0 %v226_v63 }
  0x52   :  { %430 = vmatpush.msrb.mxu1 %v733_v45  ;;  %399 = vmatpush.msrb.mxu0 %v232_v31 }
  0x54   :  { %432 = vmatpush.msrb.mxu1 %v739_v49  ;;  %403 = vmatpush.msrb.mxu0 %v238_v41 }
  0x55   :  { %405 = vmatmul.f32.vlgmr.msrb.gmra.mxu0 %v137_v42 }
  0x56   :  { %434 = vmatpush.msrb.mxu1 %v751_v54 }
  0x58   :  { %436 = vmatpush.msrb.mxu1 %v774_v1 }
  0x5a   :  { %438 = vmatpush.msrb.mxu1 %v779_v8 }
  0x5c   :  { %440 = vmatpush.msrb.mxu1 %v792_v36 }
  0x5d   :  { %442 = vmatmul.f32.vlgmr.msrb.gmra.mxu1 %v137_v42 }
  0xb6   :  { %v143_v4 = vpop.f32.mrf.mxu0 }
  0xba   :  { %v244_v3 = vpop.f32.mrf.mxu1  ;;  %v337_v11 = vpop.f32.mrf.mxu3 }
  0xbb   :  { %v245_v5 = vadd.f32 %v244_v3, %v143_v4 }
  0xbc   :  { %v298_v9 = vpop.f32.mrf.mxu2 }
  0xbd   :  { %v299_v10 = vadd.f32 %v298_v9, %v245_v5 }
  0xbf   :  { %v338_v14 = vadd.f32 %v337_v11, %v299_v10 }
  0xd2   :  { %v406_v16 = vpop.f32.mrf.mxu0 }
  0xd3   :  { %v407_v18 = vadd.f32 %v406_v16, %v338_v14 }
  0xda   :  { %v443_v20 = vpop.f32.mrf.mxu1 }
  0xdb   :  { %v444_v22 = vadd.f32 %v443_v20, %v407_v18 }
  0xdd   :  { %v448_v24 = vadd.f32 %v447_v19, %v444_v22 }
  0xdf   :  { %v451_v27 = vadd.f32 %v450_v23, %v448_v24 }
  0xe1   :  { %v453_v28 = vadd.f32 %v452_v25, %v451_v27 }
  0xe3   :  { %454 = vst [vmem:[#allocation10] sm:$0xff] %v453_v28 }
  0xe4   :  { %465 = dma.vmem_to_hbm [thread:$0]  %s461_s3, 128, %s463_s11, [#allocation4]  }
  0xe5   :  { %609 = dma.done.wait [#allocation4], 128  }
  0xe6   :  { %610 = vsyncadd [#allocation4], 4294967168 }
  0xe7   :  { %470 = vsyncpa [#allocation3], 1 }
  0xe8   :  { %471 = vsyncpa [#allocation6], 1 }
  0xe9   :  { %472 = vsyncpa [#allocation9], 1 }
  0xea   :  { %473 = vsyncpa [#allocation4], 1 }

</bundles_post_ra>
